<compile_context>
chip_gen: v5e
topology: v5e:2x2
jax: 0.10.0
libtpu: 0.0.40
codegen_flags: <defaults>
</compile_context>

<pallas_src>
import functools

import jax
import jax.numpy as jnp
from jax.experimental import pallas as pl
from jax.experimental.pallas import tpu as pltpu

LANE = 128  # TPU lane width (last-dim tiling unit)


def _round_up(n, m):
    return ((n + m - 1) // m) * m


def _pad2d(a, rows, cols):
    r, c = a.shape
    return jnp.pad(a, ((0, rows - r), (0, cols - c)))


def policy_kernel(x_ref, w1_ref, b1_ref, w2_ref, b2_ref, o_ref, *, a_real):
    # fc1 + ReLU  (all dims padded to 128 -> full MXU passes, unmasked vregs)
    x = x_ref[...]                                            # (tile_B, S_pad)
    h = jnp.dot(x, w1_ref[...],
                preferred_element_type=jnp.float32) + b1_ref[...]   # (tile_B, H_pad)
    h = jnp.maximum(h, 0.0)

    # fc2
    logits = jnp.dot(h, w2_ref[...],
                     preferred_element_type=jnp.float32) + b2_ref[...]  # (tile_B, A_pad)

    # Mask padded action columns (zero weights/bias would otherwise inject
    # logit==0 into the softmax), then stable softmax over the last axis
    # (== PyTorch Softmax(dim=1) for 2-D input).
    col = jax.lax.broadcasted_iota(jnp.int32, logits.shape, 1)
    logits = jnp.where(col < a_real, logits, jnp.float32(-1e30))
    m = jnp.max(logits, axis=-1, keepdims=True)
    e = jnp.exp(logits - m)
    denom = jnp.sum(e, axis=-1, keepdims=True)
    o_ref[...] = e * pl.reciprocal(denom, approx=True)


def policy_forward(x, w1, b1, w2, b2, *, block_b=256):
    """x: (B, S) f32. w1: (S, H), b1: (1, H), w2: (H, A), b2: (1, A).

    Returns (B, A) action probabilities (softmax over dim=1).
    """
    B, S = x.shape
    H = w1.shape[1]
    A = w2.shape[1]

    S_pad = _round_up(S, LANE)
    H_pad = _round_up(H, LANE)
    A_pad = _round_up(A, LANE)
    B_pad = _round_up(max(B, 1), block_b)

    # Zero-pad everything to lane-dense shapes (exact for the affine layers).
    x_p = _pad2d(x.astype(jnp.float32), B_pad, S_pad)
    w1_p = _pad2d(w1.astype(jnp.float32), S_pad, H_pad)
    b1_p = _pad2d(b1.reshape(1, -1).astype(jnp.float32), 1, H_pad)
    w2_p = _pad2d(w2.astype(jnp.float32), H_pad, A_pad)
    b2_p = _pad2d(b2.reshape(1, -1).astype(jnp.float32), 1, A_pad)

    grid = (B_pad // block_b,)

    out = pl.pallas_call(
        functools.partial(policy_kernel, a_real=A),
        out_shape=jax.ShapeDtypeStruct((B_pad, A_pad), jnp.float32),
        grid=grid,
        in_specs=[
            pl.BlockSpec((block_b, S_pad), lambda i: (i, 0)),   # x tile per step
            pl.BlockSpec((S_pad, H_pad), lambda i: (0, 0)),     # weights stay resident
            pl.BlockSpec((1, H_pad), lambda i: (0, 0)),
            pl.BlockSpec((H_pad, A_pad), lambda i: (0, 0)),
            pl.BlockSpec((1, A_pad), lambda i: (0, 0)),
        ],
        out_specs=pl.BlockSpec((block_b, A_pad), lambda i: (i, 0)),  # lane-dense store
        compiler_params=pltpu.CompilerParams(
            dimension_semantics=("parallel",)),   # megacore split on v7x
    )(x_p, w1_p, b1_p, w2_p, b2_p)

    return out[:B, :A]


def init_params(key, s_size=37, h_size=100, a_size=4):
    # Deterministic init mimicking nn.Linear's uniform(-1/sqrt(fan_in), +1/sqrt(fan_in)).
    # Weights are stored pre-transposed as (in_features, out_features).
    k1, k2, k3, k4 = jax.random.split(key, 4)
    lim1 = 1.0 / jnp.sqrt(float(s_size))
    lim2 = 1.0 / jnp.sqrt(float(h_size))
    w1 = jax.random.uniform(k1, (s_size, h_size), jnp.float32, -lim1, lim1)
    b1 = jax.random.uniform(k2, (1, h_size), jnp.float32, -lim1, lim1)
    w2 = jax.random.uniform(k3, (h_size, a_size), jnp.float32, -lim2, lim2)
    b2 = jax.random.uniform(k4, (1, a_size), jnp.float32, -lim2, lim2)
    return w1, b1, w2, b2


def reference_forward(x, w1, b1, w2, b2):
    h = jnp.maximum(x @ w1 + b1, 0.0)
    logits = h @ w2 + b2
    return jax.nn.softmax(logits, axis=1)


if __name__ == "__main__":
    key = jax.random.PRNGKey(0)
    kx, kp, kx2 = jax.random.split(key, 3)

    S, H, A = 37, 100, 4
    w1, b1, w2, b2 = init_params(kp, S, H, A)

    # Small case matching the module's act() path (single/tiny batch).
    B = 2
    x = jax.random.normal(kx, (B, S), dtype=jnp.float32)
    out = jax.block_until_ready(policy_forward(x, w1, b1, w2, b2))
    ref = reference_forward(x, w1, b1, w2, b2)
    assert out.shape == (B, A)
    assert jnp.allclose(out, ref, atol=1e-3, rtol=1e-3)
    assert jnp.allclose(jnp.sum(out, axis=1), jnp.ones((B,)), atol=1e-3)

    # Batched rollout case: non-multiple batch exercises the multi-tile grid
    # and the padding/slicing path.
    B2 = 517
    x2 = jax.random.normal(kx2, (B2, S), dtype=jnp.float32)
    out2 = jax.block_until_ready(policy_forward(x2, w1, b1, w2, b2))
    ref2 = reference_forward(x2, w1, b1, w2, b2)
    assert out2.shape == (B2, A)
    assert jnp.allclose(out2, ref2, atol=1e-3, rtol=1e-3)
    assert jnp.allclose(jnp.sum(out2, axis=1), jnp.ones((B2,)), atol=1e-3)

    print("KERNEL_OK")
</pallas_src>

<mosaic_0001>
module attributes {stable_mosaic.version = 11 : i64} {
  func.func @policy_kernel(%arg0: i32, %arg1: memref<256x128xf32, #tpu.memory_space<vmem>>, %arg2: memref<128x128xf32, #tpu.memory_space<vmem>>, %arg3: memref<1x128xf32, #tpu.memory_space<vmem>>, %arg4: memref<128x128xf32, #tpu.memory_space<vmem>>, %arg5: memref<1x128xf32, #tpu.memory_space<vmem>>, %arg6: memref<256x128xf32, #tpu.memory_space<vmem>>) attributes {dimension_semantics = [#tpu.dimension_semantics<parallel>], iteration_bounds = array<i64: 1>, scalar_prefetch = 0 : i64, scratch_operands = 0 : i64, tpu.core_type = #tpu.core_type<tc>, window_params = [{transform_indices = @transform_0, window_bounds = array<i64: 256, 128>}, {pipeline_mode = #tpu.pipeline_mode<synchronous>, transform_indices = @transform_1, window_bounds = array<i64: 128, 128>}, {pipeline_mode = #tpu.pipeline_mode<synchronous>, transform_indices = @transform_2, window_bounds = array<i64: 1, 128>}, {pipeline_mode = #tpu.pipeline_mode<synchronous>, transform_indices = @transform_3, window_bounds = array<i64: 128, 128>}, {pipeline_mode = #tpu.pipeline_mode<synchronous>, transform_indices = @transform_4, window_bounds = array<i64: 1, 128>}, {transform_indices = @transform_5, window_bounds = array<i64: 256, 128>}]} {
    %c0 = arith.constant 0 : index
    %c0_0 = arith.constant 0 : index
    %0 = vector.load %arg1[%c0, %c0_0] : memref<256x128xf32, #tpu.memory_space<vmem>>, vector<256x128xf32>
    %c0_1 = arith.constant 0 : index
    %c0_2 = arith.constant 0 : index
    %1 = vector.load %arg2[%c0_1, %c0_2] : memref<128x128xf32, #tpu.memory_space<vmem>>, vector<128x128xf32>
    %cst = arith.constant dense<0.000000e+00> : vector<256x128xf32>
    %2 = tpu.matmul %0, %1, %cst {dimension_numbers = #tpu.dot_dimension_numbers<[1], [0], [0], [1], [0, 0, 1, 1], [], []>} : vector<256x128xf32>, vector<128x128xf32>, vector<256x128xf32> -> vector<256x128xf32>
    %c0_3 = arith.constant 0 : index
    %c0_4 = arith.constant 0 : index
    %3 = vector.load %arg3[%c0_3, %c0_4] : memref<1x128xf32, #tpu.memory_space<vmem>>, vector<1x128xf32>
    %4 = vector.broadcast %3 : vector<1x128xf32> to vector<256x128xf32>
    %5 = arith.addf %2, %4 : vector<256x128xf32>
    %cst_5 = arith.constant 0.000000e+00 : f32
    %6 = vector.broadcast %cst_5 : f32 to vector<256x128xf32>
    %7 = arith.maximumf %5, %6 : vector<256x128xf32>
    %c0_6 = arith.constant 0 : index
    %c0_7 = arith.constant 0 : index
    %8 = vector.load %arg4[%c0_6, %c0_7] : memref<128x128xf32, #tpu.memory_space<vmem>>, vector<128x128xf32>
    %cst_8 = arith.constant dense<0.000000e+00> : vector<256x128xf32>
    %9 = tpu.matmul %7, %8, %cst_8 {dimension_numbers = #tpu.dot_dimension_numbers<[1], [0], [0], [1], [0, 0, 1, 1], [], []>} : vector<256x128xf32>, vector<128x128xf32>, vector<256x128xf32> -> vector<256x128xf32>
    %c0_9 = arith.constant 0 : index
    %c0_10 = arith.constant 0 : index
    %10 = vector.load %arg5[%c0_9, %c0_10] : memref<1x128xf32, #tpu.memory_space<vmem>>, vector<1x128xf32>
    %11 = vector.broadcast %10 : vector<1x128xf32> to vector<256x128xf32>
    %12 = arith.addf %9, %11 : vector<256x128xf32>
    %13 = tpu.iota {dimensions = array<i32: 1>} : vector<256x128xi32>
    %c4_i32 = arith.constant 4 : i32
    %14 = vector.broadcast %c4_i32 : i32 to vector<256x128xi32>
    %15 = arith.cmpi slt, %13, %14 : vector<256x128xi32>
    %cst_11 = arith.constant -1.000000e+30 : f32
    %16 = vector.broadcast %cst_11 : f32 to vector<256x128xf32>
    %17 = arith.select %15, %12, %16 : vector<256x128xi1>, vector<256x128xf32>
    %cst_12 = arith.constant dense<0xFF800000> : vector<256xf32>
    %18 = vector.multi_reduction <maximumf>, %17, %cst_12 [1] : vector<256x128xf32> to vector<256xf32>
    %19 = vector.shape_cast %18 : vector<256xf32> to vector<256x1xf32>
    %20 = vector.broadcast %19 : vector<256x1xf32> to vector<256x128xf32>
    %21 = arith.subf %17, %20 : vector<256x128xf32>
    %22 = math.exp %21 : vector<256x128xf32>
    %cst_13 = arith.constant dense<0.000000e+00> : vector<256xf32>
    %23 = vector.multi_reduction <add>, %22, %cst_13 [1] : vector<256x128xf32> to vector<256xf32>
    %24 = vector.shape_cast %23 : vector<256xf32> to vector<256x1xf32>
    %25 = tpu.reciprocal %24 {approx = true} : vector<256x1xf32> -> vector<256x1xf32>
    %26 = vector.broadcast %25 : vector<256x1xf32> to vector<256x128xf32>
    %27 = arith.mulf %22, %26 : vector<256x128xf32>
    %c0_14 = arith.constant 0 : index
    %c0_15 = arith.constant 0 : index
    %28 = vector.load %arg6[%c0_14, %c0_15] : memref<256x128xf32, #tpu.memory_space<vmem>>, vector<256x128xf32>
    tpu.vector_store %arg6[%c0_14, %c0_15], %27 {strides = array<i32>} : memref<256x128xf32, #tpu.memory_space<vmem>>, vector<256x128xf32>,
    return
  }
  func.func @transform_0(%arg0: i32) -> (i32, i32) {
    %c0_i32 = arith.constant 0 : i32
    %c0_i32_0 = arith.constant 0 : i32
    return %arg0, %c0_i32 : i32, i32
  }
  func.func @transform_1(%arg0: i32) -> (i32, i32) {
    %c0_i32 = arith.constant 0 : i32
    %c0_i32_0 = arith.constant 0 : i32
    %c0_i32_1 = arith.constant 0 : i32
    return %c0_i32, %c0_i32_0 : i32, i32
  }
  func.func @transform_2(%arg0: i32) -> (i32, i32) {
    %c0_i32 = arith.constant 0 : i32
    %c0_i32_0 = arith.constant 0 : i32
    %c0_i32_1 = arith.constant 0 : i32
    return %c0_i32, %c0_i32_0 : i32, i32
  }
  func.func @transform_3(%arg0: i32) -> (i32, i32) {
    %c0_i32 = arith.constant 0 : i32
    %c0_i32_0 = arith.constant 0 : i32
    %c0_i32_1 = arith.constant 0 : i32
    return %c0_i32, %c0_i32_0 : i32, i32
  }
  func.func @transform_4(%arg0: i32) -> (i32, i32) {
    %c0_i32 = arith.constant 0 : i32
    %c0_i32_0 = arith.constant 0 : i32
    %c0_i32_1 = arith.constant 0 : i32
    return %c0_i32, %c0_i32_0 : i32, i32
  }
  func.func @transform_5(%arg0: i32) -> (i32, i32) {
    %c0_i32 = arith.constant 0 : i32
    %c0_i32_0 = arith.constant 0 : i32
    return %arg0, %c0_i32 : i32, i32
  }
}

</mosaic_0001>

<bundles_post_ra>
// kernel: tpu_custom_call.1
= control target key start
LH: loop header
LB: loop body
LE: loop exit
PB: predicated region body
PF: predicated region fallthrough
CT: control target
= control target key end

     0   :  { %10 = vsyncpa [#allocation3], 0  ;;  %s1500_s0 = inlined_call_operand.hbm [shape: f32[256,128], index: 0, kind: input, shape index: {}]   ;;  %s1501_s1 = inlined_call_operand.hbm [shape: f32[128,128], index: 1, kind: input, shape index: {}]   ;;  %s1502_s2 = inlined_call_operand.vmem [shape: f32[1,128], index: 2, kind: input, shape index: {}]   ;;  %s1503_s3 = inlined_call_operand.hbm [shape: f32[128,128], index: 3, kind: input, shape index: {}]   ;;  %s1504_s4 = inlined_call_operand.vmem [shape: f32[1,128], index: 4, kind: input, shape index: {}]   ;;  %s1505_s5 = inlined_call_operand.hbm [shape: f32[256,128], index: 5, kind: output, shape index: {}]  }
   0x1   :  { %11 = vsyncpa [#allocation6], 0 }
   0x2   :  { %12 = vsyncpa [#allocation4], 0  ;;  %s30_s20 = sshll.u32 %s1501_s1, 4  ;;  %s1043_s21 = smov [#allocation5]   ;;  %s31_s20 = int_to_ptr.hbm [resolvable:$true] %s30_s20 }
   0x3   :  { %s32_s22 = sshll.u32 %s1043_s21, 4  ;;  %s17_s25 = sshll.u32 %s1500_s0, 4  ;;  %s33_s22 = int_to_ptr.vmem [resolvable:$true] %s32_s22  ;;  %s18_s25 = int_to_ptr.hbm [resolvable:$true] %s17_s25 }
   0x4   :  { %s1044_s26 = smov 128   ;;  %s1045_s27 = smov 8  }
   0x5   :  { %38 = dma.hbm_to_vmem [thread:$0]  %s31_s20, 2048, %s33_s22, [#allocation6], %s1044_s26, %s1044_s26, %s1045_s27  }
   0x6   :  { %s1046_s28 = smov [#allocation2]   ;;  %s45_s1 = sshll.u32 %s1503_s3, 4  ;;  %s46_s1 = int_to_ptr.hbm [resolvable:$true] %s45_s1 }
   0x7   :  { %s19_s29 = sshll.u32 %s1046_s28, 4  ;;  %s1047_s0 = smov [#allocation7]   ;;  %s20_s29 = int_to_ptr.vmem [resolvable:$true] %s19_s29 }
   0x8   :  { %25 = dma.hbm_to_vmem [thread:$0]  %s18_s25, 4096, %s20_s29, [#allocation3], %s1044_s26, %s1044_s26, %s1045_s27  }
   0x9   :  { %s47_s7 = sshll.u32 %s1047_s0, 4  ;;  %s48_s7 = int_to_ptr.vmem [resolvable:$true] %s47_s7 }
   0xa   :  { %53 = dma.hbm_to_vmem [thread:$0]  %s46_s1, 2048, %s48_s7, [#allocation6], %s1044_s26, %s1044_s26, %s1045_s27  }
   0xb   :  { %1037 = dma.done.wait [#allocation3], 4096  }
   0xc   :  { %1038 = vsyncadd [#allocation3], 4294963200 }
   0xd   :  { %1039 = dma.done.wait [#allocation6], 4096  }
   0xe   :  { %1040 = vsyncadd [#allocation6], 4294963200  ;;  %v115_v0 = vld [vmem:[#allocation5 + $0x78] sm:$0xff]  ;;  %v114_v1 = vld [vmem:[#allocation5 + $0x70] sm:$0xff]  ;;  %s759_s13 = sshll.u32 %s1505_s5, 4  ;;  %s760_s13 = int_to_ptr.hbm [resolvable:$true] %s759_s13 }
   0xf   :  { %120 = vmatpush.msra.mxu0 %v115_v0  ;;  %773 = vmatpush.msra.mxu2 %v115_v0  ;;  %v113_v2 = vld [vmem:[#allocation5 + $0x68] sm:$0xff]  ;;  %v112_v3 = vld [vmem:[#allocation5 + $0x60] sm:$0xff]  ;;  %v111_v4 = vld [vmem:[#allocation5 + $0x58] sm:$0xff] }
  0x10   :  { %v110_v5 = vld [vmem:[#allocation5 + $0x50] sm:$0xff]  ;;  %v109_v6 = vld [vmem:[#allocation5 + $0x48] sm:$0xff]  ;;  %v108_v7 = vld [vmem:[#allocation5 + $0x40] sm:$0xff] }
  0x11   :  { %121 = vmatpush.msra.mxu0 %v114_v1  ;;  %774 = vmatpush.msra.mxu2 %v114_v1  ;;  %v107_v8 = vld [vmem:[#allocation5 + $0x38] sm:$0xff]  ;;  %v106_v9 = vld [vmem:[#allocation5 + $0x30] sm:$0xff]  ;;  %v105_v10 = vld [vmem:[#allocation5 + $0x28] sm:$0xff] }
  0x12   :  { %v104_v11 = vld [vmem:[#allocation5 + $0x20] sm:$0xff]  ;;  %v103_v12 = vld [vmem:[#allocation5 + $0x18] sm:$0xff]  ;;  %v102_v13 = vld [vmem:[#allocation5 + $0x10] sm:$0xff] }
  0x13   :  { %122 = vmatpush.msra.mxu0 %v113_v2  ;;  %775 = vmatpush.msra.mxu2 %v113_v2  ;;  %v101_v14 = vld [vmem:[#allocation5 + $0x8] sm:$0xff]  ;;  %v100_v15 = vld [vmem:[#allocation5] sm:$0xff]  ;;  %v70_v20 = vld [vmem:[#allocation2 + $0x10] sm:$0xff] }
  0x14   :  { %v68_v16 = vld [vmem:[#allocation2] sm:$0xff]  ;;  %v69_v18 = vld [vmem:[#allocation2 + $0x8] sm:$0xff]  ;;  %v86_v21 = vld [vmem:[#allocation2 + $0x90] sm:$0xff] }
  0x15   :  { %123 = vmatpush.msra.mxu0 %v112_v3  ;;  %776 = vmatpush.msra.mxu2 %v112_v3  ;;  %v84_v17 = vld [vmem:[#allocation2 + $0x80] sm:$0xff]  ;;  %v85_v19 = vld [vmem:[#allocation2 + $0x88] sm:$0xff]  ;;  %v71_v22 = vld [vmem:[#allocation2 + $0x18] sm:$0xff] }
  0x16   :  { %v87_v23 = vld [vmem:[#allocation2 + $0x98] sm:$0xff]  ;;  %v72_v24 = vld [vmem:[#allocation2 + $0x20] sm:$0xff]  ;;  %v73_v26 = vld [vmem:[#allocation2 + $0x28] sm:$0xff] }
  0x17   :  { %124 = vmatpush.msra.mxu0 %v111_v4  ;;  %777 = vmatpush.msra.mxu2 %v111_v4  ;;  %v88_v25 = vld [vmem:[#allocation2 + $0xa0] sm:$0xff]  ;;  %v89_v27 = vld [vmem:[#allocation2 + $0xa8] sm:$0xff]  ;;  %v74_v28 = vld [vmem:[#allocation2 + $0x30] sm:$0xff] }
  0x18   :  { %v90_v29 = vld [vmem:[#allocation2 + $0xb0] sm:$0xff]  ;;  %v75_v30 = vld [vmem:[#allocation2 + $0x38] sm:$0xff]  ;;  %v76_v32 = vld [vmem:[#allocation2 + $0x40] sm:$0xff] }
  0x19   :  { %125 = vmatpush.msra.mxu0 %v110_v5  ;;  %778 = vmatpush.msra.mxu2 %v110_v5  ;;  %v91_v31 = vld [vmem:[#allocation2 + $0xb8] sm:$0xff]  ;;  %v92_v33 = vld [vmem:[#allocation2 + $0xc0] sm:$0xff]  ;;  %v279_v35 = vld [vmem:[#allocation7 + $0x70] sm:$0xff] }
  0x1a   :  { %v280_v34 = vld [vmem:[#allocation7 + $0x78] sm:$0xff]  ;;  %v278_v36 = vld [vmem:[#allocation7 + $0x68] sm:$0xff]  ;;  %v277_v39 = vld [vmem:[#allocation7 + $0x60] sm:$0xff] }
  0x1b   :  { %126 = vmatpush.msra.mxu0 %v109_v6  ;;  %779 = vmatpush.msra.mxu2 %v109_v6  ;;  %v77_v37 = vld [vmem:[#allocation2 + $0x48] sm:$0xff]  ;;  %v276_v40 = vld [vmem:[#allocation7 + $0x58] sm:$0xff]  ;;  %v275_v41 = vld [vmem:[#allocation7 + $0x50] sm:$0xff] }
  0x1c   :  { %285 = vmatpush.msra.mxu1 %v280_v34  ;;  %789 = vmatpush.msra.mxu3 %v280_v34  ;;  %v93_v38 = vld [vmem:[#allocation2 + $0xc8] sm:$0xff]  ;;  %v78_v43 = vld [vmem:[#allocation2 + $0x50] sm:$0xff]  ;;  %v273_v45 = vld [vmem:[#allocation7 + $0x40] sm:$0xff] }
  0x1d   :  { %127 = vmatpush.msra.mxu0 %v108_v7  ;;  %780 = vmatpush.msra.mxu2 %v108_v7  ;;  %v274_v42 = vld [vmem:[#allocation7 + $0x48] sm:$0xff]  ;;  %v94_v44 = vld [vmem:[#allocation2 + $0xd0] sm:$0xff]  ;;  %v272_v46 = vld [vmem:[#allocation7 + $0x38] sm:$0xff] }
  0x1e   :  { %286 = vmatpush.msra.mxu1 %v279_v35  ;;  %790 = vmatpush.msra.mxu3 %v279_v35  ;;  %v271_v47 = vld [vmem:[#allocation7 + $0x30] sm:$0xff]  ;;  %v270_v48 = vld [vmem:[#allocation7 + $0x28] sm:$0xff]  ;;  %v79_v49 = vld [vmem:[#allocation2 + $0x58] sm:$0xff] }
  0x1f   :  { %128 = vmatpush.msra.mxu0 %v107_v8  ;;  %781 = vmatpush.msra.mxu2 %v107_v8  ;;  %v95_v50 = vld [vmem:[#allocation2 + $0xd8] sm:$0xff]  ;;  %v269_v51 = vld [vmem:[#allocation7 + $0x20] sm:$0xff]  ;;  %v267_v53 = vld [vmem:[#allocation7 + $0x10] sm:$0xff] }
  0x20   :  { %287 = vmatpush.msra.mxu1 %v278_v36  ;;  %791 = vmatpush.msra.mxu3 %v278_v36  ;;  %v268_v52 = vld [vmem:[#allocation7 + $0x18] sm:$0xff]  ;;  %v80_v54 = vld [vmem:[#allocation2 + $0x60] sm:$0xff]  ;;  %v266_v56 = vld [vmem:[#allocation7 + $0x8] sm:$0xff] }
  0x21   :  { %129 = vmatpush.msra.mxu0 %v106_v9  ;;  %782 = vmatpush.msra.mxu2 %v106_v9  ;;  %v96_v55 = vld [vmem:[#allocation2 + $0xe0] sm:$0xff]  ;;  %v81_v58 = vld [vmem:[#allocation2 + $0x68] sm:$0xff]  ;;  %v82_v60 = vld [vmem:[#allocation2 + $0x70] sm:$0xff] }
  0x22   :  { %288 = vmatpush.msra.mxu1 %v277_v39  ;;  %792 = vmatpush.msra.mxu3 %v277_v39  ;;  %v265_v57 = vld [vmem:[#allocation7] sm:$0xff]  ;;  %v97_v59 = vld [vmem:[#allocation2 + $0xe8] sm:$0xff]  ;;  %v98_v61 = vld [vmem:[#allocation2 + $0xf0] sm:$0xff] }
  0x23   :  { %130 = vmatpush.msra.mxu0 %v105_v10  ;;  %783 = vmatpush.msra.mxu2 %v105_v10  ;;  %v83_v62 = vld [vmem:[#allocation2 + $0x78] sm:$0xff]  ;;  %v1100_v0 = vld [vmem:[%s1502_s2] ss:$0 sm:$0xff] }
  0x24   :  { %289 = vmatpush.msra.mxu1 %v276_v40  ;;  %793 = vmatpush.msra.mxu3 %v276_v40  ;;  %v99_v63 = vld [vmem:[#allocation2 + $0xf8] sm:$0xff] }
  0x25   :  { %131 = vmatpush.msra.mxu0 %v104_v11  ;;  %784 = vmatpush.msra.mxu2 %v104_v11 }
  0x26   :  { %290 = vmatpush.msra.mxu1 %v275_v41  ;;  %794 = vmatpush.msra.mxu3 %v275_v41 }
  0x27   :  { %132 = vmatpush.msra.mxu0 %v103_v12  ;;  %785 = vmatpush.msra.mxu2 %v103_v12 }
  0x28   :  { %291 = vmatpush.msra.mxu1 %v274_v42  ;;  %795 = vmatpush.msra.mxu3 %v274_v42 }
  0x29   :  { %133 = vmatpush.msra.mxu0 %v102_v13  ;;  %786 = vmatpush.msra.mxu2 %v102_v13 }
  0x2a   :  { %292 = vmatpush.msra.mxu1 %v273_v45  ;;  %796 = vmatpush.msra.mxu3 %v273_v45 }
  0x2b   :  { %134 = vmatpush.msra.mxu0 %v101_v14  ;;  %787 = vmatpush.msra.mxu2 %v101_v14 }
  0x2c   :  { %293 = vmatpush.msra.mxu1 %v272_v46  ;;  %797 = vmatpush.msra.mxu3 %v272_v46 }
  0x2d   :  { %135 = vmatpush.msra.mxu0 %v100_v15  ;;  %788 = vmatpush.msra.mxu2 %v100_v15 }
  0x2e   :  { %136 = vmatmul.f32.vlgmr.msra.gmra.mxu0 %v68_v16  ;;  %184 = vmatmul.f32.vlgmr.msra.gmra.mxu2 %v84_v17 }
  0x2f   :  { %294 = vmatpush.msra.mxu1 %v271_v47  ;;  %798 = vmatpush.msra.mxu3 %v271_v47 }
  0x31   :  { %295 = vmatpush.msra.mxu1 %v270_v48  ;;  %799 = vmatpush.msra.mxu3 %v270_v48 }
  0x33   :  { %296 = vmatpush.msra.mxu1 %v269_v51  ;;  %800 = vmatpush.msra.mxu3 %v269_v51 }
  0x35   :  { %297 = vmatpush.msra.mxu1 %v268_v52  ;;  %801 = vmatpush.msra.mxu3 %v268_v52 }
  0x36   :  { %139 = vmatmul.f32.gmra.mxu0 %v69_v18  ;;  %187 = vmatmul.f32.gmra.mxu2 %v85_v19 }
  0x37   :  { %298 = vmatpush.msra.mxu1 %v267_v53  ;;  %802 = vmatpush.msra.mxu3 %v267_v53 }
  0x39   :  { %299 = vmatpush.msra.mxu1 %v266_v56  ;;  %803 = vmatpush.msra.mxu3 %v266_v56 }
  0x3b   :  { %300 = vmatpush.msra.mxu1 %v265_v57  ;;  %804 = vmatpush.msra.mxu3 %v265_v57 }
  0x3e   :  { %142 = vmatmul.f32.gmra.mxu0 %v70_v20  ;;  %190 = vmatmul.f32.gmra.mxu2 %v86_v21 }
  0x46   :  { %145 = vmatmul.f32.gmra.mxu0 %v71_v22  ;;  %193 = vmatmul.f32.gmra.mxu2 %v87_v23 }
  0x4e   :  { %148 = vmatmul.f32.gmra.mxu0 %v72_v24  ;;  %196 = vmatmul.f32.gmra.mxu2 %v88_v25 }
  0x56   :  { %151 = vmatmul.f32.gmra.mxu0 %v73_v26  ;;  %199 = vmatmul.f32.gmra.mxu2 %v89_v27 }
  0x5e   :  { %154 = vmatmul.f32.gmra.mxu0 %v74_v28  ;;  %202 = vmatmul.f32.gmra.mxu2 %v90_v29 }
  0x66   :  { %157 = vmatmul.f32.gmra.mxu0 %v75_v30  ;;  %205 = vmatmul.f32.gmra.mxu2 %v91_v31 }
  0x6e   :  { %160 = vmatmul.f32.gmra.mxu0 %v76_v32  ;;  %208 = vmatmul.f32.gmra.mxu2 %v92_v33 }
  0x76   :  { %163 = vmatmul.f32.gmra.mxu0 %v77_v37  ;;  %211 = vmatmul.f32.gmra.mxu2 %v93_v38 }
  0x7e   :  { %166 = vmatmul.f32.gmra.mxu0 %v78_v43  ;;  %214 = vmatmul.f32.gmra.mxu2 %v94_v44 }
  0x86   :  { %169 = vmatmul.f32.gmra.mxu0 %v79_v49  ;;  %217 = vmatmul.f32.gmra.mxu2 %v95_v50 }
  0x8e   :  { %172 = vmatmul.f32.gmra.mxu0 %v80_v54  ;;  %220 = vmatmul.f32.gmra.mxu2 %v96_v55 }
  0x96   :  { %175 = vmatmul.f32.gmra.mxu0 %v81_v58  ;;  %223 = vmatmul.f32.gmra.mxu2 %v97_v59 }
  0x9e   :  { %178 = vmatmul.f32.gmra.mxu0 %v82_v60  ;;  %226 = vmatmul.f32.gmra.mxu2 %v98_v61 }
  0xa6   :  { %181 = vmatmul.f32.gmra.mxu0 %v83_v62  ;;  %229 = vmatmul.f32.gmra.mxu2 %v99_v63 }
  0xab   :  { %v137_v1 = vpop.f32.mrf.mxu0 }
  0xac   :  { %v138_v2 = vadd.f32 %v1100_v0, %v137_v1 }
  0xae   :  { %v233_v3 = vmax.f32 %v138_v2, 0.0 }
  0xb0   :  { %301 = vmatmul.f32.vlgmr.msra.gmra.mxu1 %v233_v3 }
  0xb1   :  { %v185_v4 = vpop.f32.mrf.mxu2 }
  0xb2   :  { %v186_v5 = vadd.f32 %v1100_v0, %v185_v4 }
  0xb3   :  { %v140_v6 = vpop.f32.mrf.mxu0 }
  0xb4   :  { %v249_v7 = vmax.f32 %v186_v5, 0.0  ;;  %v141_v8 = vadd.f32 %v1100_v0, %v140_v6 }
  0xb6   :  { %v234_v9 = vmax.f32 %v141_v8, 0.0  ;;  %349 = vmatmul.f32.vlgmr.msra.gmra.mxu3 %v249_v7 }
  0xb8   :  { %304 = vmatmul.f32.gmra.mxu1 %v234_v9 }
  0xb9   :  { %v188_v10 = vpop.f32.mrf.mxu2 }
  0xba   :  { %v189_v11 = vadd.f32 %v1100_v0, %v188_v10 }
  0xbb   :  { %v143_v12 = vpop.f32.mrf.mxu0 }
  0xbc   :  { %v250_v13 = vmax.f32 %v189_v11, 0.0  ;;  %v144_v14 = vadd.f32 %v1100_v0, %v143_v12 }
  0xbe   :  { %v235_v15 = vmax.f32 %v144_v14, 0.0  ;;  %352 = vmatmul.f32.gmra.mxu3 %v250_v13 }
  0xc0   :  { %307 = vmatmul.f32.gmra.mxu1 %v235_v15 }
  0xc1   :  { %v191_v16 = vpop.f32.mrf.mxu2 }
  0xc2   :  { %v192_v17 = vadd.f32 %v1100_v0, %v191_v16 }
  0xc3   :  { %v146_v18 = vpop.f32.mrf.mxu0 }
  0xc4   :  { %v251_v19 = vmax.f32 %v192_v17, 0.0  ;;  %v147_v20 = vadd.f32 %v1100_v0, %v146_v18 }
  0xc6   :  { %v236_v21 = vmax.f32 %v147_v20, 0.0  ;;  %355 = vmatmul.f32.gmra.mxu3 %v251_v19 }
  0xc8   :  { %310 = vmatmul.f32.gmra.mxu1 %v236_v21 }
  0xc9   :  { %v194_v22 = vpop.f32.mrf.mxu2 }
  0xca   :  { %v195_v23 = vadd.f32 %v1100_v0, %v194_v22 }
  0xcb   :  { %v149_v24 = vpop.f32.mrf.mxu0 }
  0xcc   :  { %v252_v25 = vmax.f32 %v195_v23, 0.0  ;;  %v150_v26 = vadd.f32 %v1100_v0, %v149_v24 }
  0xce   :  { %v237_v27 = vmax.f32 %v150_v26, 0.0  ;;  %358 = vmatmul.f32.gmra.mxu3 %v252_v25 }
  0xd0   :  { %313 = vmatmul.f32.gmra.mxu1 %v237_v27 }
  0xd1   :  { %v197_v28 = vpop.f32.mrf.mxu2 }
  0xd2   :  { %v198_v29 = vadd.f32 %v1100_v0, %v197_v28 }
  0xd3   :  { %v152_v30 = vpop.f32.mrf.mxu0 }
  0xd4   :  { %v253_v31 = vmax.f32 %v198_v29, 0.0  ;;  %v153_v32 = vadd.f32 %v1100_v0, %v152_v30  ;;  %v398_v30 = vlaneseq }
  0xd6   :  { %v238_v33 = vmax.f32 %v153_v32, 0.0  ;;  %361 = vmatmul.f32.gmra.mxu3 %v253_v31 }
  0xd8   :  { %316 = vmatmul.f32.gmra.mxu1 %v238_v33  ;;  %v1133_v33 = vand.u32 127, %v398_v30 }
  0xd9   :  { %v200_v34 = vpop.f32.mrf.mxu2 }
  0xda   :  { %v201_v35 = vadd.f32 %v1100_v0, %v200_v34  ;;  %vm400_vm0 = vcmp.lt.s32.totalorder %v1133_v33, 4 }
  0xdb   :  { %v155_v36 = vpop.f32.mrf.mxu0 }
  0xdc   :  { %v254_v37 = vmax.f32 %v201_v35, 0.0  ;;  %v156_v38 = vadd.f32 %v1100_v0, %v155_v36  ;;  %v1139_v35 = vld [vmem:[%s1504_s4] ss:$0 sm:$0xff]  ;;  %s1048_s4 = smov [#allocation8]  }
  0xdd   :  { %s757_s10 = sshll.u32 %s1048_s4, 4  ;;  %s758_s10 = int_to_ptr.vmem [resolvable:$true] %s757_s10 }
  0xde   :  { %v239_v39 = vmax.f32 %v156_v38, 0.0  ;;  %364 = vmatmul.f32.gmra.mxu3 %v254_v37 }
  0xe0   :  { %319 = vmatmul.f32.gmra.mxu1 %v239_v39 }
  0xe1   :  { %v203_v40 = vpop.f32.mrf.mxu2 }
  0xe2   :  { %v204_v41 = vadd.f32 %v1100_v0, %v203_v40 }
  0xe3   :  { %v158_v42 = vpop.f32.mrf.mxu0 }
  0xe4   :  { %v255_v43 = vmax.f32 %v204_v41, 0.0  ;;  %v159_v44 = vadd.f32 %v1100_v0, %v158_v42 }
  0xe6   :  { %v240_v45 = vmax.f32 %v159_v44, 0.0  ;;  %367 = vmatmul.f32.gmra.mxu3 %v255_v43 }
  0xe8   :  { %322 = vmatmul.f32.gmra.mxu1 %v240_v45 }
  0xe9   :  { %v206_v46 = vpop.f32.mrf.mxu2 }
  0xea   :  { %v207_v47 = vadd.f32 %v1100_v0, %v206_v46 }
  0xeb   :  { %v161_v48 = vpop.f32.mrf.mxu0 }
  0xec   :  { %v256_v49 = vmax.f32 %v207_v47, 0.0  ;;  %v162_v50 = vadd.f32 %v1100_v0, %v161_v48 }
  0xee   :  { %v241_v51 = vmax.f32 %v162_v50, 0.0  ;;  %370 = vmatmul.f32.gmra.mxu3 %v256_v49 }
  0xf0   :  { %325 = vmatmul.f32.gmra.mxu1 %v241_v51 }
  0xf1   :  { %v209_v52 = vpop.f32.mrf.mxu2 }
  0xf2   :  { %v210_v53 = vadd.f32 %v1100_v0, %v209_v52 }
  0xf3   :  { %v164_v54 = vpop.f32.mrf.mxu0 }
  0xf4   :  { %v257_v55 = vmax.f32 %v210_v53, 0.0  ;;  %v165_v56 = vadd.f32 %v1100_v0, %v164_v54 }
  0xf6   :  { %v242_v57 = vmax.f32 %v165_v56, 0.0  ;;  %373 = vmatmul.f32.gmra.mxu3 %v257_v55 }
  0xf8   :  { %328 = vmatmul.f32.gmra.mxu1 %v242_v57 }
  0xf9   :  { %v212_v58 = vpop.f32.mrf.mxu2 }
  0xfa   :  { %v213_v59 = vadd.f32 %v1100_v0, %v212_v58 }
  0xfb   :  { %v167_v60 = vpop.f32.mrf.mxu0 }
  0xfc   :  { %v258_v61 = vmax.f32 %v213_v59, 0.0  ;;  %v168_v62 = vadd.f32 %v1100_v0, %v167_v60 }
  0xfe   :  { %v243_v63 = vmax.f32 %v168_v62, 0.0  ;;  %376 = vmatmul.f32.gmra.mxu3 %v258_v61 }
 0x100   :  { %331 = vmatmul.f32.gmra.mxu1 %v243_v63 }
 0x101   :  { %v215_v1 = vpop.f32.mrf.mxu2 }
 0x102   :  { %v216_v2 = vadd.f32 %v1100_v0, %v215_v1 }
 0x103   :  { %v170_v3 = vpop.f32.mrf.mxu0 }
 0x104   :  { %v259_v4 = vmax.f32 %v216_v2, 0.0  ;;  %v171_v5 = vadd.f32 %v1100_v0, %v170_v3 }
 0x106   :  { %v244_v6 = vmax.f32 %v171_v5, 0.0  ;;  %379 = vmatmul.f32.gmra.mxu3 %v259_v4 }
 0x108   :  { %334 = vmatmul.f32.gmra.mxu1 %v244_v6 }
 0x109   :  { %v218_v7 = vpop.f32.mrf.mxu2 }
 0x10a   :  { %v219_v8 = vadd.f32 %v1100_v0, %v218_v7 }
 0x10b   :  { %v173_v9 = vpop.f32.mrf.mxu0 }
 0x10c   :  { %v260_v10 = vmax.f32 %v219_v8, 0.0  ;;  %v174_v11 = vadd.f32 %v1100_v0, %v173_v9 }
 0x10e   :  { %v245_v12 = vmax.f32 %v174_v11, 0.0  ;;  %382 = vmatmul.f32.gmra.mxu3 %v260_v10 }
 0x110   :  { %337 = vmatmul.f32.gmra.mxu1 %v245_v12 }
 0x111   :  { %v221_v13 = vpop.f32.mrf.mxu2 }
 0x112   :  { %v222_v14 = vadd.f32 %v1100_v0, %v221_v13 }
 0x113   :  { %v176_v15 = vpop.f32.mrf.mxu0 }
 0x114   :  { %v261_v16 = vmax.f32 %v222_v14, 0.0  ;;  %v177_v17 = vadd.f32 %v1100_v0, %v176_v15 }
 0x116   :  { %v246_v18 = vmax.f32 %v177_v17, 0.0  ;;  %385 = vmatmul.f32.gmra.mxu3 %v261_v16 }
 0x118   :  { %340 = vmatmul.f32.gmra.mxu1 %v246_v18 }
 0x119   :  { %v224_v19 = vpop.f32.mrf.mxu2 }
 0x11a   :  { %v225_v20 = vadd.f32 %v1100_v0, %v224_v19 }
 0x11b   :  { %v179_v21 = vpop.f32.mrf.mxu0 }
 0x11c   :  { %v262_v22 = vmax.f32 %v225_v20, 0.0  ;;  %v180_v23 = vadd.f32 %v1100_v0, %v179_v21 }
 0x11e   :  { %v247_v24 = vmax.f32 %v180_v23, 0.0  ;;  %388 = vmatmul.f32.gmra.mxu3 %v262_v22 }
 0x120   :  { %343 = vmatmul.f32.gmra.mxu1 %v247_v24 }
 0x121   :  { %v227_v25 = vpop.f32.mrf.mxu2 }
 0x122   :  { %v228_v26 = vadd.f32 %v1100_v0, %v227_v25 }
 0x123   :  { %v182_v27 = vpop.f32.mrf.mxu0 }
 0x124   :  { %v263_v28 = vmax.f32 %v228_v26, 0.0  ;;  %v183_v29 = vadd.f32 %v1100_v0, %v182_v27 }
 0x126   :  { %v248_v31 = vmax.f32 %v183_v29, 0.0  ;;  %391 = vmatmul.f32.gmra.mxu3 %v263_v28 }
 0x128   :  { %346 = vmatmul.f32.gmra.mxu1 %v248_v31 }
 0x129   :  { %v230_v32 = vpop.f32.mrf.mxu2 }
 0x12a   :  { %v231_v34 = vadd.f32 %v1100_v0, %v230_v32 }
 0x12c   :  { %v264_v36 = vmax.f32 %v231_v34, 0.0 }
 0x12d   :  { %v302_v37 = vpop.f32.mrf.mxu1 }
 0x12e   :  { %v303_v38 = vadd.f32 %v1139_v35, %v302_v37  ;;  %394 = vmatmul.f32.gmra.mxu3 %v264_v36 }
 0x130   :  { %v1145_v39 = vsel %vm400_vm0, %v303_v38, -1e+30 }
 0x131   :  { %433 = vmax.xlane.f32.xlu0 %v1145_v39 }
 0x135   :  { %v305_v40 = vpop.f32.mrf.mxu1 }
 0x136   :  { %v306_v0 = vadd.f32 %v1139_v35, %v305_v40 }
 0x138   :  { %v1151_v41 = vsel %vm400_vm0, %v306_v0, -1e+30 }
 0x139   :  { %v350_v42 = vpop.f32.mrf.mxu3  ;;  %435 = vmax.xlane.f32.xlu0 %v1151_v41 }
 0x13a   :  { %v351_v43 = vadd.f32 %v1139_v35, %v350_v42 }
 0x13c   :  { %v1157_v44 = vsel %vm400_vm0, %v351_v43, -1e+30 }
 0x13d   :  { %465 = vmax.xlane.f32.xlu1 %v1157_v44  ;;  %v308_v45 = vpop.f32.mrf.mxu1 }
 0x13e   :  { %v309_v46 = vadd.f32 %v1139_v35, %v308_v45 }
 0x140   :  { %v1164_v49 = vsel %vm400_vm0, %v309_v46, -1e+30 }
 0x141   :  { %v353_v47 = vpop.f32.mrf.mxu3 }
 0x142   :  { %v354_v48 = vadd.f32 %v1139_v35, %v353_v47 }
 0x144   :  { %v1168_v50 = vsel %vm400_vm0, %v354_v48, -1e+30 }
 0x145   :  { %467 = vmax.xlane.f32.xlu2 %v1168_v50  ;;  %v311_v51 = vpop.f32.mrf.mxu1  ;;  %437 = vmax.xlane.f32.xlu1 %v1164_v49 }
 0x146   :  { %v312_v52 = vadd.f32 %v1139_v35, %v311_v51 }
 0x148   :  { %v1176_v55 = vsel %vm400_vm0, %v312_v52, -1e+30 }
 0x149   :  { %v356_v53 = vpop.f32.mrf.mxu3 }
 0x14a   :  { %v357_v54 = vadd.f32 %v1139_v35, %v356_v53 }
 0x14c   :  { %v1180_v56 = vsel %vm400_vm0, %v357_v54, -1e+30 }
 0x14d   :  { %v314_v57 = vpop.f32.mrf.mxu1  ;;  %439 = vmax.xlane.f32.xlu1 %v1176_v55  ;;  %469 = vmax.xlane.f32.xlu0 %v1180_v56 }
 0x14e   :  { %v315_v58 = vadd.f32 %v1139_v35, %v314_v57 }
 0x150   :  { %v1187_v59 = vsel %vm400_vm0, %v315_v58, -1e+30 }
 0x151   :  { %v359_v60 = vpop.f32.mrf.mxu3  ;;  %441 = vmax.xlane.f32.xlu2 %v1187_v59 }
 0x152   :  { %v360_v61 = vadd.f32 %v1139_v35, %v359_v60 }
 0x154   :  { %v1193_v62 = vsel %vm400_vm0, %v360_v61, -1e+30 }
 0x155   :  { %v317_v63 = vpop.f32.mrf.mxu1  ;;  %471 = vmax.xlane.f32.xlu1 %v1193_v62 }
 0x156   :  { %v318_v1 = vadd.f32 %v1139_v35, %v317_v63 }
 0x158   :  { %v1199_v2 = vsel %vm400_vm0, %v318_v1, -1e+30 }
 0x159   :  { %v362_v3 = vpop.f32.mrf.mxu3  ;;  %443 = vmax.xlane.f32.xlu2 %v1199_v2 }
 0x15a   :  { %v363_v4 = vadd.f32 %v1139_v35, %v362_v3 }
 0x15c   :  { %v1206_v7 = vsel %vm400_vm0, %v363_v4, -1e+30 }
 0x15d   :  { %v320_v5 = vpop.f32.mrf.mxu1 }
 0x15e   :  { %v321_v6 = vadd.f32 %v1139_v35, %v320_v5 }
 0x160   :  { %v1210_v8 = vsel %vm400_vm0, %v321_v6, -1e+30 }
 0x161   :  { %v365_v9 = vpop.f32.mrf.mxu3  ;;  %473 = vmax.xlane.f32.xlu2 %v1206_v7  ;;  %445 = vmax.xlane.f32.xlu0 %v1210_v8 }
 0x162   :  { %v366_v10 = vadd.f32 %v1139_v35, %v365_v9 }
 0x164   :  { %v1222_v14 = vsel %vm400_vm0, %v366_v10, -1e+30 }
 0x165   :  { %v323_v11 = vpop.f32.mrf.mxu1 }
 0x166   :  { %v324_v12 = vadd.f32 %v1139_v35, %v323_v11 }
 0x168   :  { %v1218_v13 = vsel %vm400_vm0, %v324_v12, -1e+30 }
 0x169   :  { %v368_v15 = vpop.f32.mrf.mxu3  ;;  %447 = vmax.xlane.f32.xlu1 %v1218_v13  ;;  %475 = vmax.xlane.f32.xlu0 %v1222_v14 }
 0x16a   :  { %v369_v16 = vadd.f32 %v1139_v35, %v368_v15 }
 0x16c   :  { %v1234_v20 = vsel %vm400_vm0, %v369_v16, -1e+30 }
 0x16d   :  { %v326_v17 = vpop.f32.mrf.mxu1 }
 0x16e   :  { %v327_v18 = vadd.f32 %v1139_v35, %v326_v17 }
 0x170   :  { %v1230_v19 = vsel %vm400_vm0, %v327_v18, -1e+30 }
 0x171   :  { %v371_v21 = vpop.f32.mrf.mxu3  ;;  %449 = vmax.xlane.f32.xlu2 %v1230_v19  ;;  %477 = vmax.xlane.f32.xlu1 %v1234_v20 }
 0x172   :  { %v372_v22 = vadd.f32 %v1139_v35, %v371_v21 }
 0x174   :  { %v1242_v25 = vsel %vm400_vm0, %v372_v22, -1e+30 }
 0x175   :  { %v329_v23 = vpop.f32.mrf.mxu1 }
 0x176   :  { %v330_v24 = vadd.f32 %v1139_v35, %v329_v23 }
 0x178   :  { %v1246_v26 = vsel %vm400_vm0, %v330_v24, -1e+30 }
 0x179   :  { %v374_v27 = vpop.f32.mrf.mxu3  ;;  %479 = vmax.xlane.f32.xlu2 %v1242_v25  ;;  %451 = vmax.xlane.f32.xlu0 %v1246_v26 }
 0x17a   :  { %v375_v28 = vadd.f32 %v1139_v35, %v374_v27 }
 0x17c   :  { %v1258_v32 = vsel %vm400_vm0, %v375_v28, -1e+30 }
 0x17d   :  { %v332_v29 = vpop.f32.mrf.mxu1 }
 0x17e   :  { %v333_v30 = vadd.f32 %v1139_v35, %v332_v29 }
 0x180   :  { %v1254_v31 = vsel %vm400_vm0, %v333_v30, -1e+30 }
 0x181   :  { %v377_v34 = vpop.f32.mrf.mxu3  ;;  %453 = vmax.xlane.f32.xlu1 %v1254_v31  ;;  %481 = vmax.xlane.f32.xlu0 %v1258_v32 }
 0x182   :  { %v378_v36 = vadd.f32 %v1139_v35, %v377_v34 }
 0x184   :  { %v1270_v0 = vsel %vm400_vm0, %v378_v36, -1e+30 }
 0x185   :  { %v335_v37 = vpop.f32.mrf.mxu1 }
 0x186   :  { %v336_v38 = vadd.f32 %v1139_v35, %v335_v37 }
 0x188   :  { %v1266_v40 = vsel %vm400_vm0, %v336_v38, -1e+30 }
 0x189   :  { %v380_v42 = vpop.f32.mrf.mxu3  ;;  %455 = vmax.xlane.f32.xlu2 %v1266_v40  ;;  %483 = vmax.xlane.f32.xlu1 %v1270_v0 }
 0x18a   :  { %v381_v43 = vadd.f32 %v1139_v35, %v380_v42 }
 0x18c   :  { %v1278_v47 = vsel %vm400_vm0, %v381_v43, -1e+30 }
 0x18d   :  { %v338_v45 = vpop.f32.mrf.mxu1 }
 0x18e   :  { %v339_v46 = vadd.f32 %v1139_v35, %v338_v45 }
 0x190   :  { %v1282_v48 = vsel %vm400_vm0, %v339_v46, -1e+30 }
 0x191   :  { %v383_v51 = vpop.f32.mrf.mxu3  ;;  %485 = vmax.xlane.f32.xlu2 %v1278_v47  ;;  %457 = vmax.xlane.f32.xlu0 %v1282_v48 }
 0x192   :  { %v384_v52 = vadd.f32 %v1139_v35, %v383_v51 }
 0x194   :  { %v1294_v58 = vsel %vm400_vm0, %v384_v52, -1e+30 }
 0x195   :  { %v341_v53 = vpop.f32.mrf.mxu1 }
 0x196   :  { %v342_v54 = vadd.f32 %v1139_v35, %v341_v53 }
 0x198   :  { %v1290_v57 = vsel %vm400_vm0, %v342_v54, -1e+30 }
 0x199   :  { %v386_v60 = vpop.f32.mrf.mxu3  ;;  %459 = vmax.xlane.f32.xlu1 %v1290_v57  ;;  %487 = vmax.xlane.f32.xlu0 %v1294_v58 }
 0x19a   :  { %v387_v61 = vadd.f32 %v1139_v35, %v386_v60 }
 0x19c   :  { %v1306_v4 = vsel %vm400_vm0, %v387_v61, -1e+30 }
 0x19d   :  { %v344_v63 = vpop.f32.mrf.mxu1 }
 0x19e   :  { %v345_v1 = vadd.f32 %v1139_v35, %v344_v63 }
 0x1a0   :  { %v1302_v3 = vsel %vm400_vm0, %v345_v1, -1e+30 }
 0x1a1   :  { %v389_v5 = vpop.f32.mrf.mxu3  ;;  %461 = vmax.xlane.f32.xlu2 %v1302_v3  ;;  %489 = vmax.xlane.f32.xlu1 %v1306_v4 }
 0x1a2   :  { %v390_v6 = vadd.f32 %v1139_v35, %v389_v5 }
 0x1a4   :  { %v434_v9 = vpop.xlane.xlu0 %433  ;;  %v1315_v16 = vsel %vm400_vm0, %v390_v6, -1e+30 }
 0x1a5   :  { %v497_v10 = vsub.f32 %v1145_v39, %v434_v9  ;;  %v347_v11 = vpop.f32.mrf.mxu1 }
 0x1a6   :  { %v348_v12 = vadd.f32 %v1139_v35, %v347_v11 }
 0x1a7   :  { %v529_v15 = vmul.f32 1.442695, %v497_v10 }
 0x1a8   :  { %v1319_v17 = vsel %vm400_vm0, %v348_v12, -1e+30 }
 0x1a9   :  { %813 = vpow2.f32 %v529_v15  ;;  %v392_v18 = vpop.f32.mrf.mxu3  ;;  %491 = vmax.xlane.f32.xlu2 %v1315_v16  ;;  %463 = vmax.xlane.f32.xlu0 %v1319_v17 }
 0x1aa   :  { %v393_v39 = vadd.f32 %v1139_v35, %v392_v18 }
 0x1ac   :  { %v436_v21 = vpop.xlane.xlu0 %435  ;;  %v1329_v28 = vsel %vm400_vm0, %v393_v39, -1e+30 }
 0x1ad   :  { %v498_v22 = vsub.f32 %v1151_v41, %v436_v21 }
 0x1af   :  { %v1325_v23 = vpop.eup %813  ;;  %v531_v24 = vmul.f32 1.442695, %v498_v22 }
 0x1b0   :  { %v466_v27 = vpop.xlane.xlu1 %465 }
 0x1b1   :  { %815 = vpow2.f32 %v531_v24  ;;  %v395_v29 = vpop.f32.mrf.mxu3  ;;  %493 = vmax.xlane.f32.xlu0 %v1329_v28  ;;  %593 = vadd.xlane.f32.xlu2 %v1325_v23  ;;  %v513_v30 = vsub.f32 %v1157_v44, %v466_v27 }
 0x1b2   :  { %v396_v34 = vadd.f32 %v1139_v35, %v395_v29 }
 0x1b3   :  { %v561_v36 = vmul.f32 1.442695, %v513_v30 }
 0x1b4   :  { %v1337_v41 = vsel %vm400_vm0, %v396_v34, -1e+30 }
 0x1b5   :  { %495 = vmax.xlane.f32.xlu1 %v1337_v41  ;;  %817 = vpow2.f32 %v561_v36 }
 0x1b7   :  { %v1340_v37 = vpop.eup %815 }
 0x1b8   :  { %v438_v38 = vpop.xlane.xlu1 %437  ;;  %v468_v43 = vpop.xlane.xlu2 %467 }
 0x1b9   :  { %v499_v42 = vsub.f32 %v1164_v49, %v438_v38  ;;  %595 = vadd.xlane.f32.xlu0 %v1340_v37  ;;  %v514_v44 = vsub.f32 %v1168_v50, %v468_v43 }
 0x1bb   :  { %v533_v45 = vmul.f32 1.442695, %v499_v42  ;;  %v1345_v35 = vpop.eup %817  ;;  %v563_v51 = vmul.f32 1.442695, %v514_v44 }
 0x1bd   :  { %819 = vpow2.f32 %v533_v45 }
 0x1c0   :  { %v440_v33 = vpop.xlane.xlu1 %439  ;;  %v470_v52 = vpop.xlane.xlu0 %469 }
 0x1c1   :  { %v500_v46 = vsub.f32 %v1176_v55, %v440_v33  ;;  %625 = vadd.xlane.f32.xlu0 %v1345_v35  ;;  %v515_v60 = vsub.f32 %v1180_v56, %v470_v52 }
 0x1c3   :  { %v535_v53 = vmul.f32 1.442695, %v500_v46  ;;  %v1349_v54 = vpop.eup %819  ;;  %v565_v1 = vmul.f32 1.442695, %v515_v60 }
 0x1c4   :  { %v442_v49 = vpop.xlane.xlu2 %441  ;;  %597 = vadd.xlane.f32.xlu1 %v1349_v54 }
 0x1c5   :  { %821 = vpow2.f32 %v535_v53  ;;  %v501_v61 = vsub.f32 %v1187_v59, %v442_v49 }
 0x1c6   :  { %823 = vpow2.f32 %v563_v51 }
 0x1c7   :  { %v537_v50 = vmul.f32 1.442695, %v501_v61 }
 0x1c8   :  { %v472_v63 = vpop.xlane.xlu1 %471 }
 0x1c9   :  { %825 = vpow2.f32 %v537_v50  ;;  %v516_v55 = vsub.f32 %v1193_v62, %v472_v63 }
 0x1ca   :  { %827 = vpow2.f32 %v565_v1 }
 0x1cb   :  { %v1355_v5 = vpop.eup %821  ;;  %v567_v9 = vmul.f32 1.442695, %v516_v55 }
 0x1cc   :  { %v1357_v6 = vpop.eup %823  ;;  %v444_v10 = vpop.xlane.xlu2 %443  ;;  %599 = vadd.xlane.f32.xlu2 %v1355_v5 }
 0x1cd   :  { %v502_v56 = vsub.f32 %v1199_v2, %v444_v10  ;;  %627 = vadd.xlane.f32.xlu1 %v1357_v6  ;;  %829 = vpow2.f32 %v567_v9 }
 0x1cf   :  { %v1362_v59 = vpop.eup %825  ;;  %v539_v11 = vmul.f32 1.442695, %v502_v56 }
 0x1d0   :  { %601 = vadd.xlane.f32.xlu0 %v1362_v59  ;;  %v1365_v62 = vpop.eup %827 }
 0x1d1   :  { %831 = vpow2.f32 %v539_v11 }
 0x1d3   :  { %v1370_v2 = vpop.eup %829 }
 0x1d4   :  { %v474_v12 = vpop.xlane.xlu2 %473  ;;  %629 = vadd.xlane.f32.xlu2 %v1365_v62  ;;  %v446_v15 = vpop.xlane.xlu0 %445 }
 0x1d5   :  { %v517_v18 = vsub.f32 %v1206_v7, %v474_v12  ;;  %v503_v39 = vsub.f32 %v1210_v8, %v446_v15 }
 0x1d7   :  { %v1372_v21 = vpop.eup %831  ;;  %v569_v22 = vmul.f32 1.442695, %v517_v18  ;;  %v541_v24 = vmul.f32 1.442695, %v503_v39 }
 0x1d8   :  { %603 = vadd.xlane.f32.xlu1 %v1372_v21  ;;  %631 = vadd.xlane.f32.xlu0 %v1370_v2 }
 0x1d9   :  { %833 = vpow2.f32 %v569_v22 }
 0x1da   :  { %835 = vpow2.f32 %v541_v24 }
 0x1dc   :  { %v448_v27 = vpop.xlane.xlu1 %447  ;;  %v476_v29 = vpop.xlane.xlu0 %475 }
 0x1dd   :  { %v504_v30 = vsub.f32 %v1218_v13, %v448_v27  ;;  %v518_v7 = vsub.f32 %v1222_v14, %v476_v29 }
 0x1df   :  { %v1378_v34 = vpop.eup %833  ;;  %v543_v8 = vmul.f32 1.442695, %v504_v30  ;;  %v571_v36 = vmul.f32 1.442695, %v518_v7 }
 0x1e0   :  { %v1380_v38 = vpop.eup %835  ;;  %633 = vadd.xlane.f32.xlu1 %v1378_v34 }
 0x1e1   :  { %837 = vpow2.f32 %v543_v8  ;;  %605 = vadd.xlane.f32.xlu2 %v1380_v38 }
 0x1e2   :  { %839 = vpow2.f32 %v571_v36 }
 0x1e4   :  { %v450_v42 = vpop.xlane.xlu2 %449  ;;  %v478_v43 = vpop.xlane.xlu1 %477 }
 0x1e5   :  { %v505_v45 = vsub.f32 %v1230_v19, %v450_v42  ;;  %v519_v13 = vsub.f32 %v1234_v20, %v478_v43 }
 0x1e7   :  { %v1386_v44 = vpop.eup %837  ;;  %v545_v14 = vmul.f32 1.442695, %v505_v45  ;;  %v573_v33 = vmul.f32 1.442695, %v519_v13 }
 0x1e8   :  { %v1388_v46 = vpop.eup %839  ;;  %607 = vadd.xlane.f32.xlu0 %v1386_v44 }
 0x1e9   :  { %841 = vpow2.f32 %v545_v14  ;;  %635 = vadd.xlane.f32.xlu2 %v1388_v46 }
 0x1ea   :  { %843 = vpow2.f32 %v573_v33 }
 0x1ec   :  { %v480_v51 = vpop.xlane.xlu2 %479  ;;  %v452_v52 = vpop.xlane.xlu0 %451 }
 0x1ed   :  { %v520_v53 = vsub.f32 %v1242_v25, %v480_v51  ;;  %v506_v19 = vsub.f32 %v1246_v26, %v452_v52 }
 0x1ef   :  { %v1394_v49 = vpop.eup %841  ;;  %v575_v20 = vmul.f32 1.442695, %v520_v53  ;;  %v547_v60 = vmul.f32 1.442695, %v506_v19 }
 0x1f0   :  { %v1396_v61 = vpop.eup %843  ;;  %609 = vadd.xlane.f32.xlu1 %v1394_v49 }
 0x1f1   :  { %845 = vpow2.f32 %v575_v20  ;;  %637 = vadd.xlane.f32.xlu0 %v1396_v61 }
 0x1f2   :  { %847 = vpow2.f32 %v547_v60 }
 0x1f4   :  { %v454_v50 = vpop.xlane.xlu1 %453  ;;  %v482_v63 = vpop.xlane.xlu0 %481 }
 0x1f5   :  { %v507_v1 = vsub.f32 %v1254_v31, %v454_v50  ;;  %v521_v25 = vsub.f32 %v1258_v32, %v482_v63 }
 0x1f7   :  { %v1402_v55 = vpop.eup %845  ;;  %v549_v26 = vmul.f32 1.442695, %v507_v1  ;;  %v577_v9 = vmul.f32 1.442695, %v521_v25 }
 0x1f8   :  { %v1404_v10 = vpop.eup %847  ;;  %639 = vadd.xlane.f32.xlu1 %v1402_v55 }
 0x1f9   :  { %849 = vpow2.f32 %v549_v26  ;;  %611 = vadd.xlane.f32.xlu2 %v1404_v10 }
 0x1fa   :  { %851 = vpow2.f32 %v577_v9 }
 0x1fc   :  { %v456_v56 = vpop.xlane.xlu2 %455  ;;  %v484_v11 = vpop.xlane.xlu1 %483 }
 0x1fd   :  { %v508_v12 = vsub.f32 %v1266_v40, %v456_v56  ;;  %v522_v31 = vsub.f32 %v1270_v0, %v484_v11 }
 0x1ff   :  { %v1410_v15 = vpop.eup %849  ;;  %v551_v32 = vmul.f32 1.442695, %v508_v12  ;;  %v579_v18 = vmul.f32 1.442695, %v522_v31 }
 0x200   :  { %v1412_v39 = vpop.eup %851  ;;  %613 = vadd.xlane.f32.xlu0 %v1410_v15 }
 0x201   :  { %853 = vpow2.f32 %v551_v32  ;;  %641 = vadd.xlane.f32.xlu2 %v1412_v39 }
 0x202   :  { %855 = vpow2.f32 %v579_v18 }
 0x204   :  { %v486_v22 = vpop.xlane.xlu2 %485  ;;  %v458_v24 = vpop.xlane.xlu0 %457 }
 0x205   :  { %v523_v27 = vsub.f32 %v1278_v47, %v486_v22  ;;  %v509_v40 = vsub.f32 %v1282_v48, %v458_v24 }
 0x207   :  { %v1418_v29 = vpop.eup %853  ;;  %v581_v0 = vmul.f32 1.442695, %v523_v27  ;;  %v553_v30 = vmul.f32 1.442695, %v509_v40 }
 0x208   :  { %v1420_v7 = vpop.eup %855  ;;  %615 = vadd.xlane.f32.xlu1 %v1418_v29 }
 0x209   :  { %857 = vpow2.f32 %v581_v0  ;;  %643 = vadd.xlane.f32.xlu0 %v1420_v7 }
 0x20a   :  { %859 = vpow2.f32 %v553_v30 }
 0x20c   :  { %v460_v8 = vpop.xlane.xlu1 %459  ;;  %v488_v36 = vpop.xlane.xlu0 %487 }
 0x20d   :  { %v510_v42 = vsub.f32 %v1290_v57, %v460_v8  ;;  %v524_v47 = vsub.f32 %v1294_v58, %v488_v36 }
 0x20f   :  { %v1426_v43 = vpop.eup %857  ;;  %v555_v48 = vmul.f32 1.442695, %v510_v42  ;;  %v583_v45 = vmul.f32 1.442695, %v524_v47 }
 0x210   :  { %v1428_v13 = vpop.eup %859  ;;  %645 = vadd.xlane.f32.xlu1 %v1426_v43 }
 0x211   :  { %861 = vpow2.f32 %v555_v48  ;;  %617 = vadd.xlane.f32.xlu2 %v1428_v13 }
 0x212   :  { %863 = vpow2.f32 %v583_v45 }
 0x214   :  { %v462_v14 = vpop.xlane.xlu2 %461  ;;  %v490_v33 = vpop.xlane.xlu1 %489 }
 0x215   :  { %v511_v51 = vsub.f32 %v1302_v3, %v462_v14  ;;  %v525_v57 = vsub.f32 %v1306_v4, %v490_v33 }
 0x217   :  { %v1434_v52 = vpop.eup %861  ;;  %v557_v58 = vmul.f32 1.442695, %v511_v51  ;;  %v585_v53 = vmul.f32 1.442695, %v525_v57 }
 0x218   :  { %v1436_v19 = vpop.eup %863  ;;  %619 = vadd.xlane.f32.xlu0 %v1434_v52 }
 0x219   :  { %865 = vpow2.f32 %v557_v58  ;;  %647 = vadd.xlane.f32.xlu2 %v1436_v19 }
 0x21a   :  { %867 = vpow2.f32 %v585_v53 }
 0x21c   :  { %v492_v20 = vpop.xlane.xlu2 %491  ;;  %v464_v60 = vpop.xlane.xlu0 %463 }
 0x21d   :  { %v526_v50 = vsub.f32 %v1315_v16, %v492_v20  ;;  %v512_v3 = vsub.f32 %v1319_v17, %v464_v60 }
 0x21f   :  { %v1442_v63 = vpop.eup %865  ;;  %v587_v4 = vmul.f32 1.442695, %v526_v50  ;;  %v559_v1 = vmul.f32 1.442695, %v512_v3 }
 0x220   :  { %v1444_v25 = vpop.eup %867  ;;  %621 = vadd.xlane.f32.xlu1 %v1442_v63 }
 0x221   :  { %869 = vpow2.f32 %v587_v4  ;;  %649 = vadd.xlane.f32.xlu0 %v1444_v25 }
 0x222   :  { %871 = vpow2.f32 %v559_v1 }
 0x224   :  { %v594_v26 = vpop.xlane.xlu2 %593  ;;  %v494_v9 = vpop.xlane.xlu0 %493 }
 0x225   :  { %873 = vrcp.f32 %v594_v26  ;;  %v527_v56 = vsub.f32 %v1329_v28, %v494_v9 }
 0x227   :  { %v1449_v16 = vpop.eup %869  ;;  %v589_v17 = vmul.f32 1.442695, %v527_v56 }
 0x228   :  { %v1451_v11 = vpop.eup %871  ;;  %651 = vadd.xlane.f32.xlu1 %v1449_v16  ;;  %v496_v12 = vpop.xlane.xlu1 %495 }
 0x229   :  { %875 = vpow2.f32 %v589_v17  ;;  %v528_v31 = vsub.f32 %v1337_v41, %v496_v12  ;;  %623 = vadd.xlane.f32.xlu2 %v1451_v11 }
 0x22b   :  { %v874_v32 = vpop.eup %873  ;;  %v591_v18 = vmul.f32 1.442695, %v528_v31 }
 0x22c   :  { %v689_v22 = vmul.f32 %v874_v32, %v1325_v23  ;;  %v596_v24 = vpop.xlane.xlu0 %595 }
 0x22d   :  { %877 = vpow2.f32 %v591_v18 }
 0x22e   :  { %721 = vst [vmem:[#allocation8] sm:$0xff] %v689_v22  ;;  %879 = vrcp.f32 %v596_v24 }
 0x22f   :  { %v1457_v28 = vpop.eup %875 }
 0x231   :  { %653 = vadd.xlane.f32.xlu2 %v1457_v28 }
 0x233   :  { %v1460_v27 = vpop.eup %877 }
 0x234   :  { %v880_v40 = vpop.eup %879  ;;  %655 = vadd.xlane.f32.xlu0 %v1460_v27  ;;  %v626_v41 = vpop.xlane.xlu0 %625 }
 0x235   :  { %v690_v0 = vmul.f32 %v880_v40, %v1340_v37  ;;  %881 = vrcp.f32 %v626_v41 }
 0x237   :  { %722 = vst [vmem:[#allocation8 + $0x8] sm:$0xff] %v690_v0  ;;  %v598_v30 = vpop.xlane.xlu1 %597 }
 0x238   :  { %883 = vrcp.f32 %v598_v30 }
 0x23b   :  { %v882_v23 = vpop.eup %881 }
 0x23c   :  { %v705_v8 = vmul.f32 %v882_v23, %v1345_v35 }
 0x23e   :  { %737 = vst [vmem:[#allocation8 + $0x80] sm:$0xff] %v705_v8  ;;  %v884_v36 = vpop.eup %883 }
 0x23f   :  { %v600_v42 = vpop.xlane.xlu2 %599  ;;  %v691_v47 = vmul.f32 %v884_v36, %v1349_v54 }
 0x240   :  { %v628_v48 = vpop.xlane.xlu1 %627  ;;  %885 = vrcp.f32 %v600_v42 }
 0x241   :  { %887 = vrcp.f32 %v628_v48  ;;  %723 = vst [vmem:[#allocation8 + $0x10] sm:$0xff] %v691_v47 }
 0x243   :  { %v602_v45 = vpop.xlane.xlu0 %601 }
 0x244   :  { %889 = vrcp.f32 %v602_v45 }
 0x246   :  { %v886_v14 = vpop.eup %885 }
 0x247   :  { %v888_v37 = vpop.eup %887  ;;  %v692_v33 = vmul.f32 %v886_v14, %v1355_v5  ;;  %v630_v51 = vpop.xlane.xlu2 %629 }
 0x248   :  { %v706_v57 = vmul.f32 %v888_v37, %v1357_v6  ;;  %891 = vrcp.f32 %v630_v51 }
 0x249   :  { %724 = vst [vmem:[#allocation8 + $0x18] sm:$0xff] %v692_v33 }
 0x24a   :  { %v890_v35 = vpop.eup %889  ;;  %738 = vst [vmem:[#allocation8 + $0x88] sm:$0xff] %v706_v57 }
 0x24b   :  { %v693_v58 = vmul.f32 %v890_v35, %v1362_v59  ;;  %v604_v54 = vpop.xlane.xlu1 %603  ;;  %v632_v53 = vpop.xlane.xlu0 %631 }
 0x24c   :  { %893 = vrcp.f32 %v604_v54 }
 0x24d   :  { %725 = vst [vmem:[#allocation8 + $0x20] sm:$0xff] %v693_v58  ;;  %895 = vrcp.f32 %v632_v53 }
 0x24e   :  { %v892_v20 = vpop.eup %891 }
 0x24f   :  { %v707_v60 = vmul.f32 %v892_v20, %v1365_v62 }
 0x251   :  { %739 = vst [vmem:[#allocation8 + $0x90] sm:$0xff] %v707_v60 }
 0x252   :  { %v894_v50 = vpop.eup %893 }
 0x253   :  { %v896_v5 = vpop.eup %895  ;;  %v694_v3 = vmul.f32 %v894_v50, %v1372_v21  ;;  %v634_v6 = vpop.xlane.xlu1 %633 }
 0x254   :  { %v708_v4 = vmul.f32 %v896_v5, %v1370_v2  ;;  %897 = vrcp.f32 %v634_v6  ;;  %v606_v1 = vpop.xlane.xlu2 %605 }
 0x255   :  { %726 = vst [vmem:[#allocation8 + $0x28] sm:$0xff] %v694_v3  ;;  %899 = vrcp.f32 %v606_v1 }
 0x256   :  { %740 = vst [vmem:[#allocation8 + $0x98] sm:$0xff] %v708_v4 }
 0x25a   :  { %v898_v59 = vpop.eup %897 }
 0x25b   :  { %v900_v26 = vpop.eup %899  ;;  %v709_v9 = vmul.f32 %v898_v59, %v1378_v34  ;;  %v608_v56 = vpop.xlane.xlu0 %607 }
 0x25c   :  { %v695_v62 = vmul.f32 %v900_v26, %v1380_v38  ;;  %v636_v17 = vpop.xlane.xlu2 %635  ;;  %901 = vrcp.f32 %v608_v56 }
 0x25d   :  { %741 = vst [vmem:[#allocation8 + $0xa0] sm:$0xff] %v709_v9  ;;  %903 = vrcp.f32 %v636_v17 }
 0x25e   :  { %727 = vst [vmem:[#allocation8 + $0x30] sm:$0xff] %v695_v62 }
 0x262   :  { %v902_v21 = vpop.eup %901 }
 0x263   :  { %v904_v12 = vpop.eup %903  ;;  %v696_v2 = vmul.f32 %v902_v21, %v1386_v44  ;;  %v610_v31 = vpop.xlane.xlu1 %609 }
 0x264   :  { %v710_v32 = vmul.f32 %v904_v12, %v1388_v46  ;;  %905 = vrcp.f32 %v610_v31  ;;  %v638_v18 = vpop.xlane.xlu0 %637 }
 0x265   :  { %728 = vst [vmem:[#allocation8 + $0x38] sm:$0xff] %v696_v2  ;;  %907 = vrcp.f32 %v638_v18 }
 0x266   :  { %742 = vst [vmem:[#allocation8 + $0xa8] sm:$0xff] %v710_v32 }
 0x26a   :  { %v906_v34 = vpop.eup %905 }
 0x26b   :  { %v908_v22 = vpop.eup %907  ;;  %v697_v38 = vmul.f32 %v906_v34, %v1394_v49  ;;  %v640_v24 = vpop.xlane.xlu1 %639 }
 0x26c   :  { %v711_v40 = vmul.f32 %v908_v22, %v1396_v61  ;;  %909 = vrcp.f32 %v640_v24  ;;  %v612_v41 = vpop.xlane.xlu2 %611 }
 0x26d   :  { %729 = vst [vmem:[#allocation8 + $0x40] sm:$0xff] %v697_v38  ;;  %911 = vrcp.f32 %v612_v41 }
 0x26e   :  { %743 = vst [vmem:[#allocation8 + $0xb0] sm:$0xff] %v711_v40 }
 0x272   :  { %v910_v44 = vpop.eup %909 }
 0x273   :  { %v912_v0 = vpop.eup %911  ;;  %v712_v46 = vmul.f32 %v910_v44, %v1402_v55  ;;  %v614_v30 = vpop.xlane.xlu0 %613 }
 0x274   :  { %v698_v23 = vmul.f32 %v912_v0, %v1404_v10  ;;  %v642_v8 = vpop.xlane.xlu2 %641  ;;  %913 = vrcp.f32 %v614_v30 }
 0x275   :  { %744 = vst [vmem:[#allocation8 + $0xb8] sm:$0xff] %v712_v46  ;;  %915 = vrcp.f32 %v642_v8 }
 0x276   :  { %730 = vst [vmem:[#allocation8 + $0x48] sm:$0xff] %v698_v23 }
 0x27a   :  { %v914_v49 = vpop.eup %913 }
 0x27b   :  { %v916_v36 = vpop.eup %915  ;;  %v699_v61 = vmul.f32 %v914_v49, %v1410_v15  ;;  %v616_v42 = vpop.xlane.xlu1 %615 }
 0x27c   :  { %v713_v47 = vmul.f32 %v916_v36, %v1412_v39  ;;  %917 = vrcp.f32 %v616_v42  ;;  %v644_v48 = vpop.xlane.xlu0 %643 }
 0x27d   :  { %731 = vst [vmem:[#allocation8 + $0x50] sm:$0xff] %v699_v61  ;;  %919 = vrcp.f32 %v644_v48 }
 0x27e   :  { %745 = vst [vmem:[#allocation8 + $0xc0] sm:$0xff] %v713_v47 }
 0x282   :  { %v918_v55 = vpop.eup %917 }
 0x283   :  { %v920_v45 = vpop.eup %919  ;;  %v700_v10 = vmul.f32 %v918_v55, %v1418_v29  ;;  %v646_v14 = vpop.xlane.xlu1 %645 }
 0x284   :  { %v714_v37 = vmul.f32 %v920_v45, %v1420_v7  ;;  %921 = vrcp.f32 %v646_v14  ;;  %v618_v33 = vpop.xlane.xlu2 %617 }
 0x285   :  { %732 = vst [vmem:[#allocation8 + $0x58] sm:$0xff] %v700_v10  ;;  %923 = vrcp.f32 %v618_v33 }
 0x286   :  { %746 = vst [vmem:[#allocation8 + $0xc8] sm:$0xff] %v714_v37 }
 0x28a   :  { %v922_v15 = vpop.eup %921 }
 0x28b   :  { %v924_v51 = vpop.eup %923  ;;  %v715_v39 = vmul.f32 %v922_v15, %v1426_v43  ;;  %v620_v57 = vpop.xlane.xlu0 %619 }
 0x28c   :  { %v701_v35 = vmul.f32 %v924_v51, %v1428_v13  ;;  %v648_v58 = vpop.xlane.xlu2 %647  ;;  %925 = vrcp.f32 %v620_v57 }
 0x28d   :  { %747 = vst [vmem:[#allocation8 + $0xd0] sm:$0xff] %v715_v39  ;;  %927 = vrcp.f32 %v648_v58 }
 0x28e   :  { %733 = vst [vmem:[#allocation8 + $0x60] sm:$0xff] %v701_v35 }
 0x292   :  { %v926_v29 = vpop.eup %925 }
 0x293   :  { %v928_v54 = vpop.eup %927  ;;  %v702_v7 = vmul.f32 %v926_v29, %v1434_v52  ;;  %v622_v53 = vpop.xlane.xlu1 %621 }
 0x294   :  { %v716_v20 = vmul.f32 %v928_v54, %v1436_v19  ;;  %929 = vrcp.f32 %v622_v53  ;;  %v650_v60 = vpop.xlane.xlu0 %649 }
 0x295   :  { %734 = vst [vmem:[#allocation8 + $0x68] sm:$0xff] %v702_v7  ;;  %931 = vrcp.f32 %v650_v60 }
 0x296   :  { %748 = vst [vmem:[#allocation8 + $0xd8] sm:$0xff] %v716_v20 }
 0x29a   :  { %v930_v43 = vpop.eup %929 }
 0x29b   :  { %v932_v50 = vpop.eup %931  ;;  %v703_v13 = vmul.f32 %v930_v43, %v1442_v63  ;;  %v652_v5 = vpop.xlane.xlu1 %651 }
 0x29c   :  { %v717_v3 = vmul.f32 %v932_v50, %v1444_v25  ;;  %933 = vrcp.f32 %v652_v5  ;;  %v624_v6 = vpop.xlane.xlu2 %623 }
 0x29d   :  { %735 = vst [vmem:[#allocation8 + $0x70] sm:$0xff] %v703_v13  ;;  %935 = vrcp.f32 %v624_v6 }
 0x29e   :  { %749 = vst [vmem:[#allocation8 + $0xe0] sm:$0xff] %v717_v3 }
 0x2a2   :  { %v934_v52 = vpop.eup %933 }
 0x2a3   :  { %v936_v4 = vpop.eup %935  ;;  %v718_v19 = vmul.f32 %v934_v52, %v1449_v16 }
 0x2a4   :  { %v704_v1 = vmul.f32 %v936_v4, %v1451_v11  ;;  %v654_v59 = vpop.xlane.xlu2 %653 }
 0x2a5   :  { %750 = vst [vmem:[#allocation8 + $0xe8] sm:$0xff] %v718_v19  ;;  %937 = vrcp.f32 %v654_v59 }
 0x2a6   :  { %736 = vst [vmem:[#allocation8 + $0x78] sm:$0xff] %v704_v1 }
 0x2a7   :  { %v656_v26 = vpop.xlane.xlu0 %655 }
 0x2a8   :  { %939 = vrcp.f32 %v656_v26 }
 0x2ab   :  { %v938_v63 = vpop.eup %937 }
 0x2ac   :  { %v719_v25 = vmul.f32 %v938_v63, %v1457_v28 }
 0x2ae   :  { %v940_v9 = vpop.eup %939  ;;  %751 = vst [vmem:[#allocation8 + $0xf0] sm:$0xff] %v719_v25 }
 0x2af   :  { %v720_v16 = vmul.f32 %v940_v9, %v1460_v27 }
 0x2b1   :  { %752 = vst [vmem:[#allocation8 + $0xf8] sm:$0xff] %v720_v16 }
 0x2b2   :  { %765 = dma.vmem_to_hbm [thread:$0]  %s758_s10, 4096, %s760_s13, [#allocation4], %s1044_s26, %s1044_s26, %s1045_s27  }
 0x2b3   :  { %1041 = dma.done.wait [#allocation4], 4096  }
 0x2b4   :  { %1042 = vsyncadd [#allocation4], 4294963200 }
 0x2b5   :  { %770 = vsyncpa [#allocation3], 1 }
 0x2b6   :  { %771 = vsyncpa [#allocation6], 1 }
 0x2b7   :  { %772 = vsyncpa [#allocation4], 1 }

</bundles_post_ra>
